<compile_context>
chip_gen: v6e
topology: v6e:2x2x1
jax: 0.10.0
libtpu: 0.0.40
codegen_flags: <defaults>
</compile_context>

<pallas_src>
import jax
import jax.numpy as jnp
from jax.experimental import pallas as pl
from jax.experimental.pallas import tpu as pltpu

# ---- problem sizes (small, consistent with an image-pair siamese net) ----
B = 2          # batch per branch
C = 4          # channels
H = 16         # height
W = 16         # width
D = C * H * W  # flattened feature dim = 1024
HIDDEN = 128   # hidden width of the embedding MLP
EMB = 32       # embedding dimension
EMB_PAD = 128  # lane-dense padded embedding width (multiple of 128)


def _embed_body(x, w1, b1, w2, b2):
    """Shared embedding MLP: bf16 MXU operands, f32 accumulation/elementwise."""
    h = jnp.dot(x, w1, preferred_element_type=jnp.float32) + b1     # MXU -> f32
    h = jnp.maximum(h, 0.0)                                          # ReLU in f32 (VPU)
    out = jnp.dot(h.astype(w2.dtype), w2,
                  preferred_element_type=jnp.float32) + b2           # MXU -> f32
    return out


def _siamese_kernel(x1_ref, x2_ref, w1_ref, b1_ref, w2_ref, b2_ref, o1_ref, o2_ref):
    """Weight-sharing siamese forward: same params applied to both branches.

    x1_ref, x2_ref : [B, D]        bf16
    w1_ref         : [D, HIDDEN]   bf16      b1_ref: [1, HIDDEN]   f32
    w2_ref         : [HIDDEN, 128] bf16      b2_ref: [1, 128]      f32
    o1_ref, o2_ref : [B, 128]      f32  (lane-dense; EMB cols are the first 32)
    """
    w1 = w1_ref[...]
    b1 = b1_ref[...]
    w2 = w2_ref[...]
    b2 = b2_ref[...]
    o1_ref[...] = _embed_body(x1_ref[...], w1, b1, w2, b2)
    o2_ref[...] = _embed_body(x2_ref[...], w1, b1, w2, b2)


def _single_kernel(x_ref, w1_ref, b1_ref, w2_ref, b2_ref, o_ref):
    """Single-branch embedding (SiameseNet.get_embedding)."""
    o_ref[...] = _embed_body(x_ref[...], w1_ref[...], b1_ref[...],
                             w2_ref[...], b2_ref[...])


def _flatten_bf16(x):
    # torch .view(B, -1) on NCHW, cast to bf16 for the MXU input path
    return x.reshape(x.shape[0], -1).astype(jnp.bfloat16)


def _cost(n_rows):
    flops = 2 * n_rows * (D * HIDDEN + HIDDEN * EMB_PAD)
    bytes_accessed = (n_rows * D * 2            # activations (bf16)
                      + D * HIDDEN * 2          # w1 (bf16)
                      + HIDDEN * 4              # b1 (f32)
                      + HIDDEN * EMB_PAD * 2    # w2 (bf16, padded)
                      + EMB_PAD * 4             # b2 (f32, padded)
                      + n_rows * EMB_PAD * 4)   # outputs (f32)
    return pl.CostEstimate(flops=flops, transcendentals=0,
                           bytes_accessed=bytes_accessed)


def siamese_forward(x1, x2, params):
    """Pallas equivalent of SiameseNet.forward(x1, x2) -> (output1, output2)."""
    w1, b1, w2, b2 = params
    b = x1.shape[0]
    vmem = pl.BlockSpec(memory_space=pltpu.MemorySpace.VMEM)
    o1, o2 = pl.pallas_call(
        _siamese_kernel,
        out_shape=(jax.ShapeDtypeStruct((b, EMB_PAD), jnp.float32),
                   jax.ShapeDtypeStruct((b, EMB_PAD), jnp.float32)),
        in_specs=[vmem] * 6,
        out_specs=(vmem, vmem),
        cost_estimate=_cost(2 * b),
    )(_flatten_bf16(x1), _flatten_bf16(x2), w1, b1, w2, b2)
    return o1[:, :EMB], o2[:, :EMB]


def get_embedding(x, params):
    """Pallas equivalent of SiameseNet.get_embedding(x) — single branch only."""
    w1, b1, w2, b2 = params
    b = x.shape[0]
    vmem = pl.BlockSpec(memory_space=pltpu.MemorySpace.VMEM)
    o = pl.pallas_call(
        _single_kernel,
        out_shape=jax.ShapeDtypeStruct((b, EMB_PAD), jnp.float32),
        in_specs=[vmem] * 5,
        out_specs=vmem,
        cost_estimate=_cost(b),
    )(_flatten_bf16(x), w1, b1, w2, b2)
    return o[:, :EMB]


def init_params(key):
    """Deterministic init; weights stored bf16, biases f32, EMB padded to 128."""
    k1, k2, k3, k4 = jax.random.split(key, 4)
    w1 = (jax.random.normal(k1, (D, HIDDEN), jnp.float32)
          * (1.0 / jnp.sqrt(D))).astype(jnp.bfloat16)
    b1 = jax.random.normal(k2, (1, HIDDEN), jnp.float32) * 0.01
    w2_core = (jax.random.normal(k3, (HIDDEN, EMB), jnp.float32)
               * (1.0 / jnp.sqrt(HIDDEN))).astype(jnp.bfloat16)
    b2_core = jax.random.normal(k4, (1, EMB), jnp.float32) * 0.01
    # zero-pad EMB -> EMB_PAD so the kernel writes lane-dense (128-wide) tiles
    w2 = jnp.zeros((HIDDEN, EMB_PAD), jnp.bfloat16).at[:, :EMB].set(w2_core)
    b2 = jnp.zeros((1, EMB_PAD), jnp.float32).at[:, :EMB].set(b2_core)
    return w1, b1, w2, b2


def _ref_embed(x, params):
    """Pure-JAX reference mirroring the kernel's bf16/f32 mixed precision."""
    w1, b1, w2, b2 = params
    xb = x.reshape(x.shape[0], -1).astype(jnp.bfloat16).astype(jnp.float32)
    h = jnp.maximum(xb @ w1.astype(jnp.float32) + b1, 0.0)
    hb = h.astype(jnp.bfloat16).astype(jnp.float32)
    out = hb @ w2.astype(jnp.float32) + b2
    return out[:, :EMB]


if __name__ == "__main__":
    key = jax.random.PRNGKey(0)
    kx1, kx2, kp = jax.random.split(key, 3)

    x1 = jax.random.normal(kx1, (B, C, H, W), jnp.float32)   # NCHW
    x2 = jax.random.normal(kx2, (B, C, H, W), jnp.float32)   # NCHW
    params = init_params(kp)

    out1, out2 = siamese_forward(x1, x2, params)
    emb1 = get_embedding(x1, params)
    jax.block_until_ready((out1, out2, emb1))

    r1 = _ref_embed(x1, params)
    r2 = _ref_embed(x2, params)

    assert out1.shape == (B, EMB) and out2.shape == (B, EMB)
    assert emb1.shape == (B, EMB)
    assert jnp.allclose(out1, r1, atol=2e-3, rtol=2e-3)
    assert jnp.allclose(out2, r2, atol=2e-3, rtol=2e-3)
    assert jnp.allclose(emb1, out1, atol=2e-3, rtol=2e-3)

    print("KERNEL_OK")
</pallas_src>

<mosaic_0001>
module attributes {stable_mosaic.version = 11 : i64} {
  func.func @_siamese_kernel(%arg0: memref<2x1024xbf16, #tpu.memory_space<vmem>>, %arg1: memref<2x1024xbf16, #tpu.memory_space<vmem>>, %arg2: memref<1024x128xbf16, #tpu.memory_space<vmem>>, %arg3: memref<1x128xf32, #tpu.memory_space<vmem>>, %arg4: memref<128x128xbf16, #tpu.memory_space<vmem>>, %arg5: memref<1x128xf32, #tpu.memory_space<vmem>>, %arg6: memref<2x128xf32, #tpu.memory_space<vmem>>, %arg7: memref<2x128xf32, #tpu.memory_space<vmem>>) attributes {dimension_semantics = [], scalar_prefetch = 0 : i64, scratch_operands = 0 : i64, tpu.core_type = #tpu.core_type<tc>} {
    %c0 = arith.constant 0 : index
    %c0_0 = arith.constant 0 : index
    %0 = vector.load %arg2[%c0, %c0_0] : memref<1024x128xbf16, #tpu.memory_space<vmem>>, vector<1024x128xbf16>
    %c0_1 = arith.constant 0 : index
    %c0_2 = arith.constant 0 : index
    %1 = vector.load %arg3[%c0_1, %c0_2] : memref<1x128xf32, #tpu.memory_space<vmem>>, vector<1x128xf32>
    %c0_3 = arith.constant 0 : index
    %c0_4 = arith.constant 0 : index
    %2 = vector.load %arg4[%c0_3, %c0_4] : memref<128x128xbf16, #tpu.memory_space<vmem>>, vector<128x128xbf16>
    %c0_5 = arith.constant 0 : index
    %c0_6 = arith.constant 0 : index
    %3 = vector.load %arg5[%c0_5, %c0_6] : memref<1x128xf32, #tpu.memory_space<vmem>>, vector<1x128xf32>
    %c0_7 = arith.constant 0 : index
    %c0_8 = arith.constant 0 : index
    %4 = vector.load %arg0[%c0_7, %c0_8] : memref<2x1024xbf16, #tpu.memory_space<vmem>>, vector<2x1024xbf16>
    %cst = arith.constant dense<0.000000e+00> : vector<2x128xf32>
    %5 = tpu.matmul %4, %0, %cst {dimension_numbers = #tpu.dot_dimension_numbers<[1], [0], [0], [1], [0, 0, 1, 1], [], []>} : vector<2x1024xbf16>, vector<1024x128xbf16>, vector<2x128xf32> -> vector<2x128xf32>
    %6 = vector.broadcast %1 : vector<1x128xf32> to vector<2x128xf32>
    %7 = arith.addf %5, %6 : vector<2x128xf32>
    %cst_9 = arith.constant 0.000000e+00 : f32
    %8 = vector.broadcast %cst_9 : f32 to vector<2x128xf32>
    %9 = arith.maximumf %7, %8 : vector<2x128xf32>
    %10 = arith.truncf %9 : vector<2x128xf32> to vector<2x128xbf16>
    %cst_10 = arith.constant dense<0.000000e+00> : vector<2x128xf32>
    %11 = tpu.matmul %10, %2, %cst_10 {dimension_numbers = #tpu.dot_dimension_numbers<[1], [0], [0], [1], [0, 0, 1, 1], [], []>} : vector<2x128xbf16>, vector<128x128xbf16>, vector<2x128xf32> -> vector<2x128xf32>
    %12 = vector.broadcast %3 : vector<1x128xf32> to vector<2x128xf32>
    %13 = arith.addf %11, %12 : vector<2x128xf32>
    %c0_11 = arith.constant 0 : index
    %c0_12 = arith.constant 0 : index
    %14 = vector.load %arg6[%c0_11, %c0_12] : memref<2x128xf32, #tpu.memory_space<vmem>>, vector<2x128xf32>
    tpu.vector_store %arg6[%c0_11, %c0_12], %13 {strides = array<i32>} : memref<2x128xf32, #tpu.memory_space<vmem>>, vector<2x128xf32>,
    %c0_13 = arith.constant 0 : index
    %c0_14 = arith.constant 0 : index
    %15 = vector.load %arg1[%c0_13, %c0_14] : memref<2x1024xbf16, #tpu.memory_space<vmem>>, vector<2x1024xbf16>
    %cst_15 = arith.constant dense<0.000000e+00> : vector<2x128xf32>
    %16 = tpu.matmul %15, %0, %cst_15 {dimension_numbers = #tpu.dot_dimension_numbers<[1], [0], [0], [1], [0, 0, 1, 1], [], []>} : vector<2x1024xbf16>, vector<1024x128xbf16>, vector<2x128xf32> -> vector<2x128xf32>
    %17 = vector.broadcast %1 : vector<1x128xf32> to vector<2x128xf32>
    %18 = arith.addf %16, %17 : vector<2x128xf32>
    %cst_16 = arith.constant 0.000000e+00 : f32
    %19 = vector.broadcast %cst_16 : f32 to vector<2x128xf32>
    %20 = arith.maximumf %18, %19 : vector<2x128xf32>
    %21 = arith.truncf %20 : vector<2x128xf32> to vector<2x128xbf16>
    %cst_17 = arith.constant dense<0.000000e+00> : vector<2x128xf32>
    %22 = tpu.matmul %21, %2, %cst_17 {dimension_numbers = #tpu.dot_dimension_numbers<[1], [0], [0], [1], [0, 0, 1, 1], [], []>} : vector<2x128xbf16>, vector<128x128xbf16>, vector<2x128xf32> -> vector<2x128xf32>
    %23 = vector.broadcast %3 : vector<1x128xf32> to vector<2x128xf32>
    %24 = arith.addf %22, %23 : vector<2x128xf32>
    %c0_18 = arith.constant 0 : index
    %c0_19 = arith.constant 0 : index
    %25 = vector.load %arg7[%c0_18, %c0_19] : memref<2x128xf32, #tpu.memory_space<vmem>>, vector<2x128xf32>
    tpu.vector_store %arg7[%c0_18, %c0_19], %24 {strides = array<i32>} : memref<2x128xf32, #tpu.memory_space<vmem>>, vector<2x128xf32>,
    return
  }
}

</mosaic_0001>

<bundles_post_ra>
// kernel: tpu_custom_call.1
= control target key start
LH: loop header
LB: loop body
LE: loop exit
PB: predicated region body
PF: predicated region fallthrough
CT: control target
= control target key end

     0   :  { %13 = vsyncpa [#allocation3], 0  ;;  %s2141_s0 = inlined_call_operand.hbm [shape: bf16[2,1024], index: 0, kind: input, shape index: {}]   ;;  %s2142_s1 = inlined_call_operand.hbm [shape: bf16[2,1024], index: 1, kind: input, shape index: {}]   ;;  %s2143_s2 = inlined_call_operand.hbm [shape: bf16[1024,128], index: 2, kind: input, shape index: {}]   ;;  %s2144_s3 = inlined_call_operand.vmem [shape: f32[1,128], index: 3, kind: input, shape index: {}]   ;;  %s2145_s4 = inlined_call_operand.hbm [shape: bf16[128,128], index: 4, kind: input, shape index: {}]   ;;  %s2146_s5 = inlined_call_operand.vmem [shape: f32[1,128], index: 5, kind: input, shape index: {}]   ;;  %s2147_s6 = inlined_call_operand.hbm [shape: f32[2,128], index: 6, kind: output, shape index: {0}]   ;;  %s2148_s7 = inlined_call_operand.hbm [shape: f32[2,128], index: 7, kind: output, shape index: {1}]  }
   0x1   :  { %14 = vsyncpa [#allocation6], 0 }
   0x2   :  { %15 = vsyncpa [#allocation9], 0 }
   0x3   :  { %16 = vsyncpa [#allocation4], 0 }
   0x4   :  { %17 = vsyncpa [#allocation12], 0  ;;  %s1747_s24 = smov [#allocation5]   ;;  %s1748_s26 = smov [#allocation2]  }
   0x5   :  { %s34_s25 = sshll.u32 %s1747_s24, 4  ;;  %s24_s27 = sshll.u32 %s1748_s26, 4  ;;  %s35_s25 = int_to_ptr.vmem [resolvable:$true] %s34_s25  ;;  %s25_s27 = int_to_ptr.vmem [resolvable:$true] %s24_s27 }
   0x6   :  { %s1625_s28 = scalar_lea.vmem %s35_s25, 128  ;;  %p1630_p1 = scmp.lt.s32.totalorder %s35_s25, %s35_s25 }
   0x7   :  { %p1626_p0 = scmp.ne.s32.totalorder %s35_s25, %s1625_s28  ;;  %p1631_p2 = scmp.lt.s32.totalorder %s1625_s28, %s1625_s28 }
   0x9   :  { %p1632_p3 = por %p1631_p2, %p1630_p1 }
   0xb   :  { %p1633_p4 = pnand %p1632_p3, %p1626_p0 }
   0xd   :  { %1636 = shalt.err (!%p1633_p4)
}
   0xe   :  { %37 = dma.hbm_to_vmem [thread:$0]  %s2142_s1, 128, %s35_s25, [#allocation6]  }
   0xf   :  { %s1645_s8 = scalar_lea.vmem %s25_s27, 128  ;;  %p1650_p6 = scmp.lt.s32.totalorder %s25_s27, %s25_s27 }
  0x10   :  { %p1646_p5 = scmp.ne.s32.totalorder %s25_s27, %s1645_s8  ;;  %p1651_p7 = scmp.lt.s32.totalorder %s1645_s8, %s1645_s8 }
  0x12   :  { %p1652_p8 = por %p1651_p7, %p1650_p6 }
  0x14   :  { %p1653_p9 = pnand %p1652_p8, %p1646_p5 }
  0x16   :  { %1656 = shalt.err (!%p1653_p9)
}
  0x17   :  { %27 = dma.hbm_to_vmem [thread:$0]  %s2141_s0, 128, %s25_s27, [#allocation3]  }
  0x18   :  { %s1749_s11 = smov [#allocation7]  }
  0x19   :  { %s43_s12 = sshll.u32 %s1749_s11, 4  ;;  %s44_s12 = int_to_ptr.vmem [resolvable:$true] %s43_s12 }
  0x1a   :  { %s1665_s13 = scalar_lea.vmem %s44_s12, 8192  ;;  %p1670_p11 = scmp.lt.s32.totalorder %s44_s12, %s44_s12 }
  0x1b   :  { %p1666_p10 = scmp.ne.s32.totalorder %s44_s12, %s1665_s13  ;;  %p1671_p12 = scmp.lt.s32.totalorder %s1665_s13, %s1665_s13 }
  0x1d   :  { %p1672_p13 = por %p1671_p12, %p1670_p11 }
  0x1f   :  { %p1673_p0 = pnand %p1672_p13, %p1666_p10 }
  0x21   :  { %1676 = shalt.err (!%p1673_p0)
}
  0x22   :  { %s1750_s1 = smov 64   ;;  %s1751_s14 = smov 4  }
  0x23   :  { %49 = dma.hbm_to_vmem [thread:$0]  %s2143_s2, 8192, %s44_s12, [#allocation6], %s1750_s1, %s1750_s1, %s1751_s14  }
  0x24   :  { %s1752_s17 = smov [#allocation8]  }
  0x25   :  { %s57_s18 = sshll.u32 %s1752_s17, 4  ;;  %s58_s18 = int_to_ptr.vmem [resolvable:$true] %s57_s18 }
  0x26   :  { %s1685_s0 = scalar_lea.vmem %s58_s18, 1024  ;;  %p1690_p2 = scmp.lt.s32.totalorder %s58_s18, %s58_s18 }
  0x27   :  { %p1686_p1 = scmp.ne.s32.totalorder %s58_s18, %s1685_s0  ;;  %p1691_p3 = scmp.lt.s32.totalorder %s1685_s0, %s1685_s0 }
  0x29   :  { %p1692_p4 = por %p1691_p3, %p1690_p2 }
  0x2b   :  { %p1693_p5 = pnand %p1692_p4, %p1686_p1 }
  0x2d   :  { %1696 = shalt.err (!%p1693_p5)
}
  0x2e   :  { %63 = dma.hbm_to_vmem [thread:$0]  %s2145_s4, 1024, %s58_s18, [#allocation9], %s1750_s1, %s1750_s1, %s1751_s14  }
  0x2f   :  { %1737 = dma.done.wait [#allocation3], 128  }
  0x30   :  { %1738 = vsyncadd [#allocation3], 4294967168 }
  0x31   :  { %1739 = dma.done.wait [#allocation6], 8320  }
  0x32   :  { %1740 = vsyncadd [#allocation6], 4294958976 }
  0x33   :  { %1741 = dma.done.wait [#allocation9], 1024  }
  0x34   :  { %1742 = vsyncadd [#allocation9], 4294966272  ;;  %v1810_v0 = vld [vmem:[#allocation7 + $0x78] sm:$0xff]   ;;  %v1821_v4 = vld [vmem:[#allocation7 + $0x70] sm:$0xff]   ;;  %v1753_v22 = vmov 1966171168   ;;  %v237_v24 = vlaneseq }
  0x35   :  { %v1812_v1 = vld [vmem:[#allocation7 + $0xf8] sm:$0xff]   ;;  %1298 = vmatprep.subr.bf16.mxu0 %v1810_v0  ;;  %v1824_v5 = vld [vmem:[#allocation7 + $0xf0] sm:$0xff]   ;;  %v1833_v8 = vld [vmem:[#allocation7 + $0x68] sm:$0xff]   ;;  %v235_v23 = vunpack.c.l.s4 %v1753_v22  ;;  %vm1755_vm0 = vmmov 0  }
  0x36   :  { %v1815_v2 = vld [vmem:[#allocation7 + $0x38] sm:$0xff]   ;;  %1320 = vmatprep.subr.bf16.mxu1 %v1812_v1  ;;  %v1827_v6 = vld [vmem:[#allocation7 + $0x30] sm:$0xff]   ;;  %v1836_v9 = vld [vmem:[#allocation7 + $0xe8] sm:$0xff]   ;;  %v238_v30 = vshrl.u32 %v237_v24, 7 }
  0x37   :  { %v1818_v3 = vld [vmem:[#allocation7 + $0xb8] sm:$0xff]   ;;  %1299 = vmatpush3.bf16.msra.mxu0 %v1815_v2  ;;  %v1830_v7 = vld [vmem:[#allocation7 + $0xb0] sm:$0xff]   ;;  %v1839_v10 = vld [vmem:[#allocation7 + $0x28] sm:$0xff]   ;;  %v236_v29 = vunpack.c.0.s8 %v235_v23 }
  0x38   :  { %1321 = vmatpush3.bf16.msra.mxu1 %v1818_v3  ;;  %1300 = vmatprep.subr.bf16.mxu0 %v1821_v4  ;;  %v1842_v11 = vld [vmem:[#allocation7 + $0xa8] sm:$0xff]   ;;  %v1845_v12 = vld [vmem:[#allocation7 + $0x60] sm:$0xff]   ;;  %v1857_v16 = vld [vmem:[#allocation7 + $0x58] sm:$0xff]  }
  0x39   :  { %1322 = vmatprep.subr.bf16.mxu1 %v1824_v5  ;;  %v1848_v13 = vld [vmem:[#allocation7 + $0xe0] sm:$0xff]   ;;  %v1860_v17 = vld [vmem:[#allocation7 + $0xd8] sm:$0xff]   ;;  %v1869_v20 = vld [vmem:[#allocation7 + $0x50] sm:$0xff]   ;;  %v1898_v35 = vsub.s32 %v236_v29, %v238_v30 }
  0x3a   :  { %v1851_v14 = vld [vmem:[#allocation7 + $0x20] sm:$0xff]   ;;  %v1863_v18 = vld [vmem:[#allocation7 + $0x18] sm:$0xff]   ;;  %v1872_v21 = vld [vmem:[#allocation7 + $0xd0] sm:$0xff]  }
  0x3b   :  { %1301 = vmatpush3.bf16.msra.mxu0 %v1827_v6  ;;  %v1854_v15 = vld [vmem:[#allocation7 + $0xa0] sm:$0xff]   ;;  %v1866_v19 = vld [vmem:[#allocation7 + $0x98] sm:$0xff]   ;;  %v1875_v25 = vld [vmem:[#allocation7 + $0x10] sm:$0xff]  }
  0x3c   :  { %1323 = vmatpush3.bf16.msra.mxu1 %v1830_v7  ;;  %1302 = vmatprep.subr.bf16.mxu0 %v1833_v8  ;;  %v1878_v26 = vld [vmem:[#allocation7 + $0x90] sm:$0xff]   ;;  %v1881_v27 = vld [vmem:[#allocation7 + $0x48] sm:$0xff]   ;;  %v1893_v33 = vld [vmem:[#allocation7 + $0x40] sm:$0xff]  }
  0x3d   :  { %1324 = vmatprep.subr.bf16.mxu1 %v1836_v9  ;;  %v1884_v28 = vld [vmem:[#allocation7 + $0xc8] sm:$0xff]   ;;  %v1896_v34 = vld [vmem:[#allocation7 + $0xc0] sm:$0xff]   ;;  %v225_v38 = vld [vmem:[#allocation2] sm:$0xff] }
  0x3e   :  { %v1887_v31 = vld [vmem:[#allocation7 + $0x8] sm:$0xff]   ;;  %v1901_v36 = vld [vmem:[#allocation7] sm:$0xff]   ;;  %v233_v39 = vcombine.high %v225_v38, %v225_v38  ;;  %v240_v40 = vrot.slane %v225_v38, %v1898_v35  ;;  %v1909_v41 = vld [vmem:[#allocation7 + $0x178] sm:$0xff]  }
  0x3f   :  { %1303 = vmatpush3.bf16.msra.mxu0 %v1839_v10  ;;  %v1890_v32 = vld [vmem:[#allocation7 + $0x88] sm:$0xff]   ;;  %v1904_v37 = vld [vmem:[#allocation7 + $0x80] sm:$0xff]   ;;  %v1911_v42 = vld [vmem:[#allocation7 + $0x1f8] sm:$0xff]  }
  0x40   :  { %1325 = vmatpush3.bf16.msra.mxu1 %v1842_v11  ;;  %1304 = vmatprep.subr.bf16.mxu0 %v1845_v12  ;;  %v248_v43 = vcombine.high %v240_v40, %v240_v40  ;;  %v256_v44 = vrot.slane %v240_v40, %v1898_v35  ;;  %v1916_v45 = vrot.slane %v233_v39, %v1898_v35  ;;  %v1919_v46 = vld [vmem:[#allocation7 + $0x138] sm:$0xff]   ;;  %v1926_v51 = vld [vmem:[#allocation7 + $0x170] sm:$0xff]   ;;  %v1937_v58 = vld [vmem:[#allocation7 + $0x168] sm:$0xff]  }
  0x41   :  { %1326 = vmatprep.subr.bf16.mxu1 %v1848_v13  ;;  %v1922_v48 = vld [vmem:[#allocation7 + $0x1b8] sm:$0xff]   ;;  %v1928_v53 = vld [vmem:[#allocation7 + $0x1f0] sm:$0xff]   ;;  %v1940_v59 = vld [vmem:[#allocation7 + $0x1e8] sm:$0xff]  }
  0x42   :  { %v270_v47 = vrot.slane %v248_v43, %v1898_v35  ;;  %v249_v49 = vcombine.high %v1916_v45, %v1916_v45  ;;  %v278_v50 = vcombine.high %v256_v44, %v256_v44  ;;  %v1931_v55 = vld [vmem:[#allocation7 + $0x130] sm:$0xff]   ;;  %v1943_v60 = vld [vmem:[#allocation7 + $0x128] sm:$0xff]   ;;  %v1949_v62 = vld [vmem:[#allocation7 + $0x160] sm:$0xff]  }
  0x43   :  { %1305 = vmatpush3.bf16.msra.mxu0 %v1851_v14  ;;  %v1934_v56 = vld [vmem:[#allocation7 + $0x1b0] sm:$0xff]   ;;  %v1946_v61 = vld [vmem:[#allocation7 + $0x1a8] sm:$0xff]   ;;  %v1952_v63 = vld [vmem:[#allocation7 + $0x1e0] sm:$0xff]  }
  0x44   :  { %1327 = vmatpush3.bf16.msra.mxu1 %v1854_v15  ;;  %1306 = vmatprep.subr.bf16.mxu0 %v1857_v16  ;;  %v280_v52 = vcombine.high %v270_v47, %v270_v47  ;;  %v277_v54 = vrot.slane %v249_v49, %v1898_v35  ;;  %v1955_v22 = vld [vmem:[#allocation7 + $0x120] sm:$0xff]   ;;  %v1961_v24 = vld [vmem:[#allocation7 + $0x158] sm:$0xff]   ;;  %v1973_v39 = vld [vmem:[#allocation7 + $0x150] sm:$0xff]  }
  0x45   :  { %1328 = vmatprep.subr.bf16.mxu1 %v1860_v17  ;;  %706 = vmatprep.mubr.bf16.mxu0 %v270_v47  ;;  %v1958_v23 = vld [vmem:[#allocation7 + $0x1a0] sm:$0xff]   ;;  %v1964_v29 = vld [vmem:[#allocation7 + $0x1d8] sm:$0xff]   ;;  %v1976_v40 = vld [vmem:[#allocation7 + $0x1d0] sm:$0xff]  }
  0x46   :  { %746 = vmatprep.mubr.bf16.mxu1 %v280_v52  ;;  %v281_v57 = vcombine.high %v277_v54, %v277_v54  ;;  %2153 = vst [vmem:[#allocation18_spill] sm:$0xff] %v1964_v29  ;;  %v1967_v30 = vld [vmem:[#allocation7 + $0x118] sm:$0xff]   ;;  %2155 = vst [vmem:[#allocation20_spill] sm:$0xff] %v1976_v40  ;;  %v1979_v43 = vld [vmem:[#allocation7 + $0x110] sm:$0xff]  }
  0x47   :  { %1307 = vmatpush3.bf16.msra.mxu0 %v1863_v18  ;;  %v1970_v38 = vld [vmem:[#allocation7 + $0x198] sm:$0xff]   ;;  %v1985_v47 = vld [vmem:[#allocation7 + $0x148] sm:$0xff]  }
  0x48   :  { %1329 = vmatpush3.bf16.msra.mxu1 %v1866_v19  ;;  %1308 = vmatprep.subr.bf16.mxu0 %v1869_v20  ;;  %2154 = vst [vmem:[#allocation19_spill] sm:$0xff] %v1970_v38  ;;  %v1988_v49 = vld [vmem:[#allocation7 + $0x1c8] sm:$0xff]  }
  0x49   :  { %1330 = vmatprep.subr.bf16.mxu1 %v1872_v21  ;;  %v1994_v52 = vld [vmem:[#allocation7 + $0x188] sm:$0xff]  }
  0x4b   :  { %1309 = vmatpush3.bf16.msra.mxu0 %v1875_v25 }
  0x4c   :  { %1331 = vmatpush3.bf16.msra.mxu1 %v1878_v26  ;;  %1310 = vmatprep.subr.bf16.mxu0 %v1881_v27 }
  0x4d   :  { %1332 = vmatprep.subr.bf16.mxu1 %v1884_v28 }
  0x4f   :  { %1311 = vmatpush3.bf16.msra.mxu0 %v1887_v31 }
  0x50   :  { %1333 = vmatpush3.bf16.msra.mxu1 %v1890_v32  ;;  %1312 = vmatprep.subr.bf16.mxu0 %v1893_v33 }
  0x51   :  { %1334 = vmatprep.subr.bf16.mxu1 %v1896_v34 }
  0x53   :  { %1313 = vmatpush3.bf16.msra.mxu0 %v1901_v36 }
  0x54   :  { %1335 = vmatpush3.bf16.msra.mxu1 %v1904_v37  ;;  %1342 = vmatprep.subr.bf16.mxu0 %v1909_v41 }
  0x55   :  { %1364 = vmatprep.subr.bf16.mxu1 %v1911_v42 }
  0x56   :  { %707 = vmatmul.mubr.bf16.vlgmr.msra.gmra.mxu0 %v256_v44  ;;  %v1982_v44 = vld [vmem:[#allocation7 + $0x190] sm:$0xff]  }
  0x57   :  { %1343 = vmatpush3.bf16.msra.mxu0 %v1919_v46  ;;  %747 = vmatmul.mubr.bf16.vlgmr.msra.gmra.mxu1 %v278_v50  ;;  %2156 = vst [vmem:[#allocation21_spill] sm:$0xff] %v1982_v44  ;;  %v1991_v50 = vld [vmem:[#allocation7 + $0x108] sm:$0xff]  }
  0x58   :  { %1344 = vmatprep.subr.bf16.mxu0 %v1926_v51  ;;  %1365 = vmatpush3.bf16.msra.mxu1 %v1922_v48 }
  0x59   :  { %786 = vmatprep.mubr.bf16.mxu0 %v277_v54  ;;  %1366 = vmatprep.subr.bf16.mxu1 %v1928_v53  ;;  %v1997_v54 = vld [vmem:[#allocation7 + $0x140] sm:$0xff]  }
  0x5a   :  { %826 = vmatprep.mubr.bf16.mxu1 %v281_v57  ;;  %v2000_v57 = vld [vmem:[#allocation7 + $0x1c0] sm:$0xff]  }
  0x5b   :  { %1345 = vmatpush3.bf16.msra.mxu0 %v1931_v55 }
  0x5c   :  { %1346 = vmatprep.subr.bf16.mxu0 %v1937_v58  ;;  %1367 = vmatpush3.bf16.msra.mxu1 %v1934_v56 }
  0x5d   :  { %1368 = vmatprep.subr.bf16.mxu1 %v1940_v59 }
  0x5f   :  { %1347 = vmatpush3.bf16.msra.mxu0 %v1943_v60 }
  0x60   :  { %1348 = vmatprep.subr.bf16.mxu0 %v1949_v62  ;;  %1369 = vmatpush3.bf16.msra.mxu1 %v1946_v61 }
  0x61   :  { %1370 = vmatprep.subr.bf16.mxu1 %v1952_v63 }
  0x63   :  { %1349 = vmatpush3.bf16.msra.mxu0 %v1955_v22 }
  0x64   :  { %1350 = vmatprep.subr.bf16.mxu0 %v1961_v24  ;;  %1371 = vmatpush3.bf16.msra.mxu1 %v1958_v23 }
  0x65   :  { %1372 = vmatprep.subr.bf16.mxu1 %v1964_v29  ;;  %v263_v29 = vrot.slane %v1916_v45, %v1898_v35 }
  0x67   :  { %1351 = vmatpush3.bf16.msra.mxu0 %v1967_v30 }
  0x68   :  { %1352 = vmatprep.subr.bf16.mxu0 %v1973_v39  ;;  %1373 = vmatpush3.bf16.msra.mxu1 %v1970_v38  ;;  %v2003_v38 = vld [vmem:[#allocation7 + $0x100] sm:$0xff]  }
  0x69   :  { %1374 = vmatprep.subr.bf16.mxu1 %v1976_v40  ;;  %v2006_v40 = vld [vmem:[#allocation7 + $0x180] sm:$0xff]  }
  0x6b   :  { %1353 = vmatpush3.bf16.msra.mxu0 %v1979_v43 }
  0x6c   :  { %1354 = vmatprep.subr.bf16.mxu0 %v1985_v47  ;;  %1375 = vmatpush3.bf16.msra.mxu1 %v1982_v44  ;;  %v279_v44 = vcombine.high %v263_v29, %v263_v29 }
  0x6d   :  { %1376 = vmatprep.subr.bf16.mxu1 %v1988_v49 }
  0x6f   :  { %1355 = vmatpush3.bf16.msra.mxu0 %v1991_v50 }
  0x70   :  { %1356 = vmatprep.subr.bf16.mxu0 %v1997_v54  ;;  %1377 = vmatpush3.bf16.msra.mxu1 %v1994_v52 }
  0x71   :  { %1378 = vmatprep.subr.bf16.mxu1 %v2000_v57 }
  0x73   :  { %1357 = vmatpush3.bf16.msra.mxu0 %v2003_v38 }
  0x74   :  { %1379 = vmatpush3.bf16.msra.mxu1 %v2006_v40 }
  0x75   :  { %1395 = vmatprep.subr.bf16.mxu1 %v1810_v0  ;;  %v1608_v0 = vld [vmem:[#allocation8 + $0x38] sm:$0xff]  }
  0x76   :  { %787 = vmatmul.mubr.bf16.vlgmr.msra.gmra.mxu0 %v263_v29  ;;  %v2089_v29 = vld [vmem:[%s2144_s3] ss:$0 sm:$0xff] }
  0x77   :  { %827 = vmatmul.mubr.bf16.vlgmr.msra.gmra.mxu1 %v279_v44 }
  0x78   :  { %1396 = vmatpush3.bf16.msra.mxu1 %v1815_v2  ;;  %v1754_v2 = vmov 0.0  }
  0x79   :  { %1397 = vmatprep.subr.bf16.mxu1 %v1821_v4  ;;  %1492 = vmatprep.subr.bf16.mxu0 %v1754_v2  ;;  %v1609_v4 = vld [vmem:[#allocation8 + $0x30] sm:$0xff]  }
  0x7a   :  { %1493 = vmatpush3.bf16.msra.mxu0 %v1608_v0  ;;  %1508 = vmatprep.mubr.msk.bf16.mxu0 %vm1755_vm0, %v1754_v2 }
  0x7b   :  { %1494 = vmatprep.subr.bf16.mxu0 %v1754_v2 }
  0x7c   :  { %1398 = vmatpush3.bf16.msra.mxu1 %v1827_v6  ;;  %v1610_v6 = vld [vmem:[#allocation8 + $0x28] sm:$0xff]  }
  0x7d   :  { %1399 = vmatprep.subr.bf16.mxu1 %v1833_v8  ;;  %v1611_v8 = vld [vmem:[#allocation8 + $0x20] sm:$0xff]  }
  0x7e   :  { %1495 = vmatpush3.bf16.msra.mxu0 %v1609_v4 }
  0x7f   :  { %1496 = vmatprep.subr.bf16.mxu0 %v1754_v2 }
  0x80   :  { %1400 = vmatpush3.bf16.msra.mxu1 %v1839_v10  ;;  %v1612_v10 = vld [vmem:[#allocation8 + $0x18] sm:$0xff]  }
  0x81   :  { %1401 = vmatprep.subr.bf16.mxu1 %v1845_v12  ;;  %v1613_v12 = vld [vmem:[#allocation8 + $0x10] sm:$0xff]  }
  0x82   :  { %1497 = vmatpush3.bf16.msra.mxu0 %v1610_v6 }
  0x83   :  { %1498 = vmatprep.subr.bf16.mxu0 %v1754_v2 }
  0x84   :  { %1402 = vmatpush3.bf16.msra.mxu1 %v1851_v14  ;;  %v1614_v14 = vld [vmem:[#allocation8 + $0x8] sm:$0xff]  }
  0x85   :  { %1403 = vmatprep.subr.bf16.mxu1 %v1857_v16  ;;  %v1615_v16 = vld [vmem:[#allocation8] sm:$0xff]  }
  0x86   :  { %1499 = vmatpush3.bf16.msra.mxu0 %v1611_v8 }
  0x87   :  { %1500 = vmatprep.subr.bf16.mxu0 %v1754_v2 }
  0x88   :  { %1404 = vmatpush3.bf16.msra.mxu1 %v1863_v18  ;;  %v931_v18 = vld [vmem:[#allocation5] sm:$0xff] }
  0x89   :  { %1405 = vmatprep.subr.bf16.mxu1 %v1869_v20  ;;  %v940_v20 = vrot.slane %v931_v18, %v1898_v35 }
  0x8a   :  { %1501 = vmatpush3.bf16.msra.mxu0 %v1612_v10 }
  0x8b   :  { %1502 = vmatprep.subr.bf16.mxu0 %v1754_v2 }
  0x8c   :  { %1406 = vmatpush3.bf16.msra.mxu1 %v1875_v25  ;;  %v948_v25 = vcombine.high %v940_v20, %v940_v20 }
  0x8d   :  { %1407 = vmatprep.subr.bf16.mxu1 %v1881_v27 }
  0x8e   :  { %1503 = vmatpush3.bf16.msra.mxu0 %v1613_v12  ;;  %v2045_v27 = vrot.slane %v948_v25, %v1898_v35 }
  0x8f   :  { %1504 = vmatprep.subr.bf16.mxu0 %v1754_v2 }
  0x90   :  { %1408 = vmatpush3.bf16.msra.mxu1 %v1887_v31  ;;  %v2048_v31 = vrot.slane %v940_v20, %v1898_v35  ;;  %1022 = vmatprep.mubr.bf16.mxu1 %v2045_v27 }
  0x91   :  { %1409 = vmatprep.subr.bf16.mxu1 %v1893_v33 }
  0x92   :  { %1505 = vmatpush3.bf16.msra.mxu0 %v1614_v14 }
  0x93   :  { %1506 = vmatprep.subr.bf16.mxu0 %v1754_v2 }
  0x94   :  { %1410 = vmatpush3.bf16.msra.mxu1 %v1901_v36 }
  0x95   :  { %1439 = vmatprep.subr.bf16.mxu1 %v1909_v41 }
  0x96   :  { %1507 = vmatpush3.bf16.msra.mxu0 %v1615_v16 }
  0x97   :  { %1417 = vmatprep.subr.bf16.mxu0 %v1812_v1  ;;  %1023 = vmatmul.mubr.bf16.vlgmr.msra.gmra.mxu1 %v2048_v31  ;;  %v933_v1 = vcombine.high %v931_v18, %v931_v18 }
  0x98   :  { %1440 = vmatpush3.bf16.msra.mxu1 %v1919_v46 }
  0x99   :  { %1441 = vmatprep.subr.bf16.mxu1 %v1926_v51  ;;  %v947_v33 = vrot.slane %v933_v1, %v1898_v35 }
  0x9b   :  { %v949_v36 = vcombine.high %v947_v33, %v947_v33  ;;  %v2072_v45 = vrot.slane %v947_v33, %v1898_v35 }
  0x9c   :  { %1442 = vmatpush3.bf16.msra.mxu1 %v1931_v55 }
  0x9d   :  { %1443 = vmatprep.subr.bf16.mxu1 %v1937_v58  ;;  %v2068_v41 = vrot.slane %v949_v36, %v1898_v35 }
  0x9f   :  { %1102 = vmatprep.mubr.bf16.mxu1 %v2068_v41 }
  0xa0   :  { %1444 = vmatpush3.bf16.msra.mxu1 %v1943_v60 }
  0xa1   :  { %1445 = vmatprep.subr.bf16.mxu1 %v1949_v62 }
  0xa4   :  { %1446 = vmatpush3.bf16.msra.mxu1 %v1955_v22 }
  0xa5   :  { %1447 = vmatprep.subr.bf16.mxu1 %v1961_v24 }
  0xa8   :  { %1448 = vmatpush3.bf16.msra.mxu1 %v1967_v30 }
  0xa9   :  { %1449 = vmatprep.subr.bf16.mxu1 %v1973_v39 }
  0xac   :  { %1450 = vmatpush3.bf16.msra.mxu1 %v1979_v43 }
  0xad   :  { %1451 = vmatprep.subr.bf16.mxu1 %v1985_v47 }
  0xb0   :  { %1452 = vmatpush3.bf16.msra.mxu1 %v1991_v50 }
  0xb1   :  { %1453 = vmatprep.subr.bf16.mxu1 %v1997_v54 }
  0xb4   :  { %1454 = vmatpush3.bf16.msra.mxu1 %v2003_v38 }
  0xb5   :  { %1512 = vmatprep.subr.bf16.mxu1 %v1754_v2 }
  0xb7   :  { %1103 = vmatmul.mubr.bf16.vlgmr.msra.gmra.mxu1 %v2072_v45 }
  0xb8   :  { %1513 = vmatpush3.bf16.msra.mxu1 %v1608_v0  ;;  %1528 = vmatprep.mubr.msk.bf16.mxu1 %vm1755_vm0, %v1754_v2 }
  0xb9   :  { %1514 = vmatprep.subr.bf16.mxu1 %v1754_v2 }
  0xbc   :  { %1515 = vmatpush3.bf16.msra.mxu1 %v1609_v4 }
  0xbd   :  { %1516 = vmatprep.subr.bf16.mxu1 %v1754_v2 }
  0xc0   :  { %1517 = vmatpush3.bf16.msra.mxu1 %v1610_v6 }
  0xc1   :  { %1518 = vmatprep.subr.bf16.mxu1 %v1754_v2 }
  0xc4   :  { %1519 = vmatpush3.bf16.msra.mxu1 %v1611_v8 }
  0xc5   :  { %1520 = vmatprep.subr.bf16.mxu1 %v1754_v2 }
  0xc8   :  { %1521 = vmatpush3.bf16.msra.mxu1 %v1612_v10 }
  0xc9   :  { %1522 = vmatprep.subr.bf16.mxu1 %v1754_v2 }
  0xcc   :  { %1523 = vmatpush3.bf16.msra.mxu1 %v1613_v12 }
  0xcd   :  { %1524 = vmatprep.subr.bf16.mxu1 %v1754_v2 }
  0xd0   :  { %1525 = vmatpush3.bf16.msra.mxu1 %v1614_v14 }
  0xd1   :  { %1526 = vmatprep.subr.bf16.mxu1 %v1754_v2 }
  0xd4   :  { %1527 = vmatpush3.bf16.msra.mxu1 %v1615_v16  ;;  %v980_v16 = vcombine.high %v2045_v27, %v2045_v27 }
 0x116   :  { %v1314_v35 = vpop.f32.mrf.mxu0 }
 0x117   :  { %v1336_v46 = vpop.f32.mrf.mxu1 }
 0x118   :  { %v1315_v51 = vpop.f32.mrf.mxu0 }
 0x119   :  { %v1337_v55 = vpop.f32.mrf.mxu1  ;;  %v1316_v24 = vadd.f32 %v1315_v51, %v1314_v35 }
 0x11a   :  { %v1317_v58 = vpop.f32.mrf.mxu0  ;;  %v1338_v38 = vadd.f32 %v1337_v55, %v1336_v46 }
 0x11b   :  { %v1339_v60 = vpop.f32.mrf.mxu1  ;;  %v709_v30 = vadd.f32 %v1316_v24, %v2089_v29 }
 0x11c   :  { %v1318_v62 = vpop.f32.mrf.mxu0 }
 0x11d   :  { %v1340_v22 = vpop.f32.mrf.mxu1  ;;  %v749_v47 = vadd.f32 %v1338_v38, %v709_v30 }
 0x136   :  { %v1358_v39 = vpop.f32.mrf.mxu0 }
 0x137   :  { %v1380_v43 = vpop.f32.mrf.mxu1 }
 0x138   :  { %v1359_v44 = vpop.f32.mrf.mxu0 }
 0x139   :  { %v1360_v50 = vadd.f32 %v1359_v44, %v1358_v39  ;;  %v1381_v54 = vpop.f32.mrf.mxu1 }
 0x13a   :  { %v1361_v0 = vpop.f32.mrf.mxu0  ;;  %v1382_v4 = vadd.f32 %v1381_v54, %v1380_v43 }
 0x13b   :  { %v789_v2 = vadd.f32 %v1360_v50, %v749_v47  ;;  %v1383_v6 = vpop.f32.mrf.mxu1 }
 0x13c   :  { %v1362_v8 = vpop.f32.mrf.mxu0 }
 0x13d   :  { %v829_v10 = vadd.f32 %v1382_v4, %v789_v2  ;;  %v1384_v12 = vpop.f32.mrf.mxu1 }
 0x13f   :  { %v834_v14 = vmax.f32 %v829_v10, 0.0 }
 0x141   :  { %v835_v18 = vpack.c.bf16 %v834_v14, %v834_v14 }
 0x143   :  { %1509 = vmatmul.mubr.bf16.vlgmr.msra.gmra.mxu0 %v835_v18 }
 0x144   :  { %1418 = vmatpush3.bf16.msra.mxu0 %v1818_v3  ;;  %1062 = vmatprep.mubr.bf16.mxu0 %v980_v16  ;;  %v978_v3 = vcombine.high %v2048_v31, %v2048_v31 }
 0x145   :  { %1419 = vmatprep.subr.bf16.mxu0 %v1824_v5  ;;  %v981_v5 = vcombine.high %v2068_v41, %v2068_v41 }
 0x148   :  { %1420 = vmatpush3.bf16.msra.mxu0 %v1830_v7  ;;  %v2157_v7 = vld [vmem:[#allocation18_spill] sm:$0xff] }
 0x149   :  { %1421 = vmatprep.subr.bf16.mxu0 %v1836_v9  ;;  %v2158_v9 = vld [vmem:[#allocation19_spill] sm:$0xff] }
 0x14c   :  { %1422 = vmatpush3.bf16.msra.mxu0 %v1842_v11  ;;  %v2159_v11 = vld [vmem:[#allocation20_spill] sm:$0xff] }
 0x14d   :  { %1423 = vmatprep.subr.bf16.mxu0 %v1848_v13  ;;  %v2160_v13 = vld [vmem:[#allocation21_spill] sm:$0xff] }
 0x150   :  { %1424 = vmatpush3.bf16.msra.mxu0 %v1854_v15  ;;  %v979_v15 = vcombine.high %v2072_v45, %v2072_v45 }
 0x151   :  { %1425 = vmatprep.subr.bf16.mxu0 %v1860_v17 }
 0x154   :  { %1426 = vmatpush3.bf16.msra.mxu0 %v1866_v19 }
 0x155   :  { %1427 = vmatprep.subr.bf16.mxu0 %v1872_v21 }
 0x157   :  { %v1411_v17 = vpop.f32.mrf.mxu1 }
 0x158   :  { %1428 = vmatpush3.bf16.msra.mxu0 %v1878_v26 }
 0x159   :  { %1429 = vmatprep.subr.bf16.mxu0 %v1884_v28  ;;  %v1412_v19 = vpop.f32.mrf.mxu1 }
 0x15a   :  { %v1413_v21 = vadd.f32 %v1412_v19, %v1411_v17 }
 0x15b   :  { %v1414_v26 = vpop.f32.mrf.mxu1 }
 0x15c   :  { %1430 = vmatpush3.bf16.msra.mxu0 %v1890_v32 }
 0x15d   :  { %1431 = vmatprep.subr.bf16.mxu0 %v1896_v34  ;;  %v1415_v28 = vpop.f32.mrf.mxu1 }
 0x160   :  { %1432 = vmatpush3.bf16.msra.mxu0 %v1904_v37 }
 0x161   :  { %1461 = vmatprep.subr.bf16.mxu0 %v1911_v42 }
 0x163   :  { %1063 = vmatmul.mubr.bf16.vlgmr.msra.gmra.mxu0 %v978_v3 }
 0x164   :  { %1462 = vmatpush3.bf16.msra.mxu0 %v1922_v48  ;;  %1142 = vmatprep.mubr.bf16.mxu0 %v981_v5 }
 0x165   :  { %1463 = vmatprep.subr.bf16.mxu0 %v1928_v53  ;;  %v1289_v53 = vld [vmem:[%s2146_s5] ss:$0 sm:$0xff]  ;;  %s1756_s5 = smov [#allocation10]  }
 0x166   :  { %s1199_s22 = sshll.u32 %s1756_s5, 4  ;;  %s1200_s22 = int_to_ptr.vmem [resolvable:$true] %s1199_s22 }
 0x167   :  { %s1697_s23 = scalar_lea.vmem %s1200_s22, 32  ;;  %p1702_p7 = scmp.lt.s32.totalorder %s1200_s22, %s1200_s22 }
 0x168   :  { %1464 = vmatpush3.bf16.msra.mxu0 %v1934_v56  ;;  %p1698_p6 = scmp.ne.s32.totalorder %s1200_s22, %s1697_s23  ;;  %p1703_p8 = scmp.lt.s32.totalorder %s1697_s23, %s1697_s23 }
 0x169   :  { %1465 = vmatprep.subr.bf16.mxu0 %v1940_v59 }
 0x16a   :  { %p1704_p9 = por %p1703_p8, %p1702_p7 }
 0x16c   :  { %1466 = vmatpush3.bf16.msra.mxu0 %v1946_v61  ;;  %p1705_p10 = pnand %p1704_p9, %p1698_p6 }
 0x16d   :  { %1467 = vmatprep.subr.bf16.mxu0 %v1952_v63 }
 0x170   :  { %1468 = vmatpush3.bf16.msra.mxu0 %v1958_v23 }
 0x171   :  { %1469 = vmatprep.subr.bf16.mxu0 %v2157_v7 }
 0x174   :  { %1470 = vmatpush3.bf16.msra.mxu0 %v2158_v9 }
 0x175   :  { %1471 = vmatprep.subr.bf16.mxu0 %v2159_v11 }
 0x177   :  { %v1455_v32 = vpop.f32.mrf.mxu1 }
 0x178   :  { %1472 = vmatpush3.bf16.msra.mxu0 %v2160_v13 }
 0x179   :  { %1473 = vmatprep.subr.bf16.mxu0 %v1988_v49  ;;  %v1456_v34 = vpop.f32.mrf.mxu1  ;;  %v1025_v49 = vadd.f32 %v1413_v21, %v2089_v29 }
 0x17a   :  { %v1457_v37 = vadd.f32 %v1456_v34, %v1455_v32 }
 0x17b   :  { %v1458_v42 = vpop.f32.mrf.mxu1 }
 0x17c   :  { %1474 = vmatpush3.bf16.msra.mxu0 %v1994_v52 }
 0x17d   :  { %1475 = vmatprep.subr.bf16.mxu0 %v2000_v57  ;;  %v1459_v48 = vpop.f32.mrf.mxu1 }
 0x180   :  { %1476 = vmatpush3.bf16.msra.mxu0 %v2006_v40 }
 0x183   :  { %1143 = vmatmul.mubr.bf16.vlgmr.msra.gmra.mxu0 %v979_v15 }
 0x203   :  { %v924_v56 = vpop.f32.mrf.mxu0 }
 0x204   :  { %v925_v59 = vadd.f32 %v1289_v53, %v924_v56 }
 0x205   :  { %v1510_v61 = vpop.f32.mrf.mxu0 }
 0x206   :  { %930 = vst [vmem:[#allocation10] sm:$0x3] %v925_v59 }
 0x207   :  { %v927_v63 = vpop.f32.mrf.mxu0 }
 0x209   :  { %v1511_v23 = vpop.f32.mrf.mxu0 }
 0x223   :  { %v1433_v40 = vpop.f32.mrf.mxu0 }
 0x225   :  { %v1434_v52 = vpop.f32.mrf.mxu0 }
 0x226   :  { %v1435_v57 = vadd.f32 %v1434_v52, %v1433_v40 }
 0x227   :  { %v1436_v20 = vpop.f32.mrf.mxu0 }
 0x228   :  { %v1065_v25 = vadd.f32 %v1435_v57, %v1025_v49 }
 0x229   :  { %v1437_v27 = vpop.f32.mrf.mxu0 }
 0x22a   :  { %v1105_v31 = vadd.f32 %v1457_v37, %v1065_v25 }
 0x243   :  { %v1477_v1 = vpop.f32.mrf.mxu0 }
 0x245   :  { %v1478_v33 = vpop.f32.mrf.mxu0 }
 0x246   :  { %v1479_v36 = vadd.f32 %v1478_v33, %v1477_v1 }
 0x247   :  { %v1480_v41 = vpop.f32.mrf.mxu0 }
 0x248   :  { %v1145_v45 = vadd.f32 %v1479_v36, %v1105_v31 }
 0x249   :  { %v1481_v35 = vpop.f32.mrf.mxu0 }
 0x24a   :  { %v1150_v46 = vmax.f32 %v1145_v45, 0.0 }
 0x24c   :  { %v1151_v51 = vpack.c.bf16 %v1150_v46, %v1150_v46 }
 0x24e   :  { %1529 = vmatmul.mubr.bf16.vlgmr.msra.gmra.mxu1 %v1151_v51 }
 0x24f   :  { %1708 = shalt.err (!%p1705_p10)
}
 0x250   :  { %1202 = dma.vmem_to_hbm [thread:$0]  %s1200_s22, 32, %s2147_s6, [#allocation4]  }
 0x251   :  { %s1757_s26 = smov [#allocation11]  }
 0x252   :  { %s1209_s27 = sshll.u32 %s1757_s26, 4  ;;  %s1210_s27 = int_to_ptr.vmem [resolvable:$true] %s1209_s27 }
 0x253   :  { %s1717_s28 = scalar_lea.vmem %s1210_s27, 32  ;;  %p1722_p12 = scmp.lt.s32.totalorder %s1210_s27, %s1210_s27 }
 0x254   :  { %p1718_p11 = scmp.ne.s32.totalorder %s1210_s27, %s1717_s28  ;;  %p1723_p13 = scmp.lt.s32.totalorder %s1717_s28, %s1717_s28 }
 0x256   :  { %p1724_p0 = por %p1723_p13, %p1722_p12 }
 0x258   :  { %p1725_p1 = pnand %p1724_p0, %p1718_p11 }
 0x30e   :  { %v1186_v55 = vpop.f32.mrf.mxu1 }
 0x30f   :  { %v1187_v58 = vadd.f32 %v1289_v53, %v1186_v55 }
 0x310   :  { %v1530_v60 = vpop.f32.mrf.mxu1 }
 0x311   :  { %1192 = vst [vmem:[#allocation11] sm:$0x3] %v1187_v58 }
 0x312   :  { %v1189_v62 = vpop.f32.mrf.mxu1 }
 0x313   :  { %1728 = shalt.err (!%p1725_p1)
}
 0x314   :  { %1212 = dma.vmem_to_hbm [thread:$0]  %s1210_s27, 32, %s2148_s7, [#allocation12]   ;;  %v1531_v22 = vpop.f32.mrf.mxu1 }
 0x315   :  { %1743 = dma.done.wait [#allocation4], 32  }
 0x316   :  { %1744 = vsyncadd [#allocation4], 4294967264 }
 0x317   :  { %1745 = dma.done.wait [#allocation12], 32  }
 0x318   :  { %1746 = vsyncadd [#allocation12], 4294967264 }
 0x319   :  { %1219 = vsyncpa [#allocation3], 1 }
 0x31a   :  { %1220 = vsyncpa [#allocation6], 1 }
 0x31b   :  { %1221 = vsyncpa [#allocation9], 1 }
 0x31c   :  { %1222 = vsyncpa [#allocation4], 1 }
 0x31d   :  { %1223 = vsyncpa [#allocation12], 1 }

</bundles_post_ra>
